<compile_context>
chip_gen: v6e
topology: v6e:2x2x1
jax: 0.10.0
libtpu: 0.0.40
codegen_flags: <defaults>
</compile_context>

<pallas_src>
import jax
import jax.numpy as jnp
from jax.experimental import pallas as pl
from jax.experimental.pallas import tpu as pltpu

BERT_OUTPUT_SIZE = 768   # tBERT.bert_output_size (fixed by the module)
HIDDEN = 256
N_CLASSES = 1            # tBERT.n_classes
OUT_PAD = 128            # lane-dense output width (column 0 holds the logit)


def tbert_head_kernel(x_ref, w1_ref, b1_ref, w2_ref, b2_ref, w3_ref, b3_ref,
                      o_ref):
    """L2-normalize CLS embeddings + 3-layer MLP classifier with sigmoid."""
    x = x_ref[...].astype(jnp.float32)                      # (bm, 768)

    # torch.nn.functional.normalize(x, p=2, dim=1): x / max(||x||_2, 1e-12)
    # == x * rsqrt(max(||x||^2, 1e-24)).  rsqrt runs on the EUP; the multiply
    # is a VPU op — keeps the divide off the VALU critical path.
    sq = jnp.sum(x * x, axis=-1, keepdims=True)             # (bm, 1)
    x = x * jax.lax.rsqrt(jnp.maximum(sq, 1e-24))

    # Linear(768, 256) + Tanh — bf16 MXU operands, f32 accumulation.
    h1 = jnp.tanh(
        jnp.dot(x.astype(jnp.bfloat16), w1_ref[...],
                preferred_element_type=jnp.float32)
        + b1_ref[...])                                       # (bm, 256) f32

    # Linear(256, 256) + Tanh — bf16 MXU operands, f32 accumulation.
    h2 = jnp.tanh(
        jnp.dot(h1.astype(jnp.bfloat16), w2_ref[...],
                preferred_element_type=jnp.float32)
        + b2_ref[...])                                       # (bm, 256) f32

    # Dropout(p=0.2) -> identity at inference time.

    # Linear(256, 1) + Sigmoid.  An N=1 matmul would occupy 1 MXU column for
    # a full push/pop, so do it on the VPU (multiply) + XLU (lane reduce).
    logits = (jnp.sum(h2 * w3_ref[...], axis=-1, keepdims=True)
              + b3_ref[...])                                 # (bm, 1)
    prob = jax.nn.sigmoid(logits)

    # Lane-dense store: replicate across 128 lanes; wrapper slices column 0.
    o_ref[...] = jnp.broadcast_to(prob, (prob.shape[0], OUT_PAD)).astype(
        o_ref.dtype)


def _round_up(x, m):
    return ((x + m - 1) // m) * m


def tbert_head(cls_emb, w1, b1, w2, b2, w3, b3, *, block_m=256):
    """cls_emb: (B, 768) float32 CLS embeddings from BERT -> (B, 1) probs."""
    B, D = cls_emb.shape
    assert D == BERT_OUTPUT_SIZE

    # Effective M tile: multiples of 128 to fill the MXU, but keep >= 2 grid
    # steps when there is enough work so both v7x TensorCores stay busy.
    if B >= 2 * 128:
        block_m = min(block_m, _round_up(pl.cdiv(B, 2), 128))
    else:
        block_m = min(block_m, _round_up(B, 8))
    block_m = max(block_m, 8)

    B_pad = _round_up(B, block_m)
    if B_pad != B:
        # Zero rows normalize to zero and are sliced off below.
        cls_emb = jnp.pad(cls_emb, ((0, B_pad - B), (0, 0)))

    # bf16 MXU operands (f32 accumulate); biases + VPU classifier stay f32.
    w1_bf = w1.astype(jnp.bfloat16)
    w2_bf = w2.astype(jnp.bfloat16)
    w3_row = jnp.reshape(w3.astype(jnp.float32), (1, HIDDEN))   # (1, 256)
    b3_s = jnp.reshape(b3.astype(jnp.float32), (1, 1))

    grid = (B_pad // block_m,)
    out_padded = pl.pallas_call(
        tbert_head_kernel,
        out_shape=jax.ShapeDtypeStruct((B_pad, OUT_PAD), jnp.float32),
        grid_spec=pltpu.PrefetchScalarGridSpec(
            num_scalar_prefetch=0,
            grid=grid,
            in_specs=[
                pl.BlockSpec((block_m, D), lambda i: (i, 0)),        # x tile
                # Weights/biases have constant index maps: Mosaic keeps them
                # resident across grid steps (no per-step refetch).
                pl.BlockSpec((D, HIDDEN), lambda i: (0, 0)),         # w1 bf16
                pl.BlockSpec((1, HIDDEN), lambda i: (0, 0)),         # b1
                pl.BlockSpec((HIDDEN, HIDDEN), lambda i: (0, 0)),    # w2 bf16
                pl.BlockSpec((1, HIDDEN), lambda i: (0, 0)),         # b2
                pl.BlockSpec((1, HIDDEN), lambda i: (0, 0)),         # w3 row
                pl.BlockSpec((1, 1), lambda i: (0, 0)),              # b3
            ],
            out_specs=pl.BlockSpec((block_m, OUT_PAD), lambda i: (i, 0)),
        ),
        compiler_params=pltpu.CompilerParams(
            dimension_semantics=("parallel",)),
    )(cls_emb, w1_bf, b1, w2_bf, b2, w3_row, b3_s)

    return out_padded[:B, :N_CLASSES]


def reference_head(cls_emb, w1, b1, w2, b2, w3, b3):
    """Pure-JAX f32 reference of the same forward pass."""
    norm = jnp.sqrt(jnp.sum(cls_emb * cls_emb, axis=1, keepdims=True))
    x = cls_emb / jnp.maximum(norm, 1e-12)
    h1 = jnp.tanh(x @ w1 + b1)
    h2 = jnp.tanh(h1 @ w2 + b2)
    logits = h2 @ w3 + b3
    return jax.nn.sigmoid(logits)


if __name__ == "__main__":
    key = jax.random.PRNGKey(0)
    k_x, k_w1, k_b1, k_w2, k_b2, k_w3, k_b3 = jax.random.split(key, 7)

    # Deterministic classifier parameters, stored transposed as (in, out).
    w1 = 0.02 * jax.random.normal(k_w1, (BERT_OUTPUT_SIZE, HIDDEN), jnp.float32)
    b1 = 0.02 * jax.random.normal(k_b1, (1, HIDDEN), jnp.float32)
    w2 = 0.02 * jax.random.normal(k_w2, (HIDDEN, HIDDEN), jnp.float32)
    b2 = 0.02 * jax.random.normal(k_b2, (1, HIDDEN), jnp.float32)
    w3 = 0.02 * jax.random.normal(k_w3, (HIDDEN, N_CLASSES), jnp.float32)
    b3 = 0.02 * jax.random.normal(k_b3, (1, N_CLASSES), jnp.float32)

    # Small batch for the basic check, plus a non-multiple batch that
    # exercises padding and the multi-step (2-tile) grid path.
    for B in (8, 300):
        kb = jax.random.fold_in(k_x, B)
        # Synthetic CLS embeddings (stand-in for BertModel(...)[0][:, 0, :]).
        cls_emb = jax.random.normal(kb, (B, BERT_OUTPUT_SIZE), jnp.float32)

        out = jax.block_until_ready(
            tbert_head(cls_emb, w1, b1, w2, b2, w3, b3))
        ref = reference_head(cls_emb, w1, b1, w2, b2, w3, b3)

        assert out.shape == (B, N_CLASSES)
        assert bool(jnp.all(jnp.isfinite(out)))
        # bf16 MXU operands (f32 accumulate) -> tolerance loosened vs f32 ref.
        assert jnp.allclose(out, ref, atol=2e-3, rtol=2e-3)

    print("KERNEL_OK")
</pallas_src>

<mosaic_0001>
module attributes {stable_mosaic.version = 11 : i64} {
  func.func @tbert_head_kernel(%arg0: i32, %arg1: memref<8x768xf32, #tpu.memory_space<vmem>>, %arg2: memref<768x256xbf16, #tpu.memory_space<vmem>>, %arg3: memref<1x256xf32, #tpu.memory_space<vmem>>, %arg4: memref<256x256xbf16, #tpu.memory_space<vmem>>, %arg5: memref<1x256xf32, #tpu.memory_space<vmem>>, %arg6: memref<1x256xf32, #tpu.memory_space<vmem>>, %arg7: memref<1x1xf32, #tpu.memory_space<vmem>>, %arg8: memref<8x128xf32, #tpu.memory_space<vmem>>) attributes {dimension_semantics = [#tpu.dimension_semantics<parallel>], iteration_bounds = array<i64: 1>, scalar_prefetch = 0 : i64, scratch_operands = 0 : i64, tpu.core_type = #tpu.core_type<tc>, window_params = [{transform_indices = @transform_0, window_bounds = array<i64: 8, 768>}, {pipeline_mode = #tpu.pipeline_mode<synchronous>, transform_indices = @transform_1, window_bounds = array<i64: 768, 256>}, {pipeline_mode = #tpu.pipeline_mode<synchronous>, transform_indices = @transform_2, window_bounds = array<i64: 1, 256>}, {pipeline_mode = #tpu.pipeline_mode<synchronous>, transform_indices = @transform_3, window_bounds = array<i64: 256, 256>}, {pipeline_mode = #tpu.pipeline_mode<synchronous>, transform_indices = @transform_4, window_bounds = array<i64: 1, 256>}, {pipeline_mode = #tpu.pipeline_mode<synchronous>, transform_indices = @transform_5, window_bounds = array<i64: 1, 256>}, {pipeline_mode = #tpu.pipeline_mode<synchronous>, transform_indices = @transform_6, window_bounds = array<i64: 1, 1>}, {transform_indices = @transform_7, window_bounds = array<i64: 8, 128>}]} {
    %c0 = arith.constant 0 : index
    %c0_0 = arith.constant 0 : index
    %0 = vector.load %arg1[%c0, %c0_0] : memref<8x768xf32, #tpu.memory_space<vmem>>, vector<8x768xf32>
    %1 = arith.mulf %0, %0 : vector<8x768xf32>
    %cst = arith.constant dense<0.000000e+00> : vector<8xf32>
    %2 = vector.multi_reduction <add>, %1, %cst [1] : vector<8x768xf32> to vector<8xf32>
    %3 = vector.shape_cast %2 : vector<8xf32> to vector<8x1xf32>
    %cst_1 = arith.constant 1.000000e-24 : f32
    %4 = vector.broadcast %cst_1 : f32 to vector<8x1xf32>
    %5 = arith.maximumf %3, %4 : vector<8x1xf32>
    %6 = math.rsqrt %5 : vector<8x1xf32>
    %7 = vector.broadcast %6 : vector<8x1xf32> to vector<8x768xf32>
    %8 = arith.mulf %0, %7 : vector<8x768xf32>
    %9 = arith.truncf %8 : vector<8x768xf32> to vector<8x768xbf16>
    %c0_2 = arith.constant 0 : index
    %c0_3 = arith.constant 0 : index
    %10 = vector.load %arg2[%c0_2, %c0_3] : memref<768x256xbf16, #tpu.memory_space<vmem>>, vector<768x256xbf16>
    %cst_4 = arith.constant dense<0.000000e+00> : vector<8x256xf32>
    %11 = tpu.matmul %9, %10, %cst_4 {dimension_numbers = #tpu.dot_dimension_numbers<[1], [0], [0], [1], [0, 0, 1, 1], [], []>} : vector<8x768xbf16>, vector<768x256xbf16>, vector<8x256xf32> -> vector<8x256xf32>
    %c0_5 = arith.constant 0 : index
    %c0_6 = arith.constant 0 : index
    %12 = vector.load %arg3[%c0_5, %c0_6] : memref<1x256xf32, #tpu.memory_space<vmem>>, vector<1x256xf32>
    %13 = vector.broadcast %12 : vector<1x256xf32> to vector<8x256xf32>
    %14 = arith.addf %11, %13 : vector<8x256xf32>
    %15 = math.tanh %14 : vector<8x256xf32>
    %16 = arith.truncf %15 : vector<8x256xf32> to vector<8x256xbf16>
    %c0_7 = arith.constant 0 : index
    %c0_8 = arith.constant 0 : index
    %17 = vector.load %arg4[%c0_7, %c0_8] : memref<256x256xbf16, #tpu.memory_space<vmem>>, vector<256x256xbf16>
    %cst_9 = arith.constant dense<0.000000e+00> : vector<8x256xf32>
    %18 = tpu.matmul %16, %17, %cst_9 {dimension_numbers = #tpu.dot_dimension_numbers<[1], [0], [0], [1], [0, 0, 1, 1], [], []>} : vector<8x256xbf16>, vector<256x256xbf16>, vector<8x256xf32> -> vector<8x256xf32>
    %c0_10 = arith.constant 0 : index
    %c0_11 = arith.constant 0 : index
    %19 = vector.load %arg5[%c0_10, %c0_11] : memref<1x256xf32, #tpu.memory_space<vmem>>, vector<1x256xf32>
    %20 = vector.broadcast %19 : vector<1x256xf32> to vector<8x256xf32>
    %21 = arith.addf %18, %20 : vector<8x256xf32>
    %22 = math.tanh %21 : vector<8x256xf32>
    %c0_12 = arith.constant 0 : index
    %c0_13 = arith.constant 0 : index
    %23 = vector.load %arg6[%c0_12, %c0_13] : memref<1x256xf32, #tpu.memory_space<vmem>>, vector<1x256xf32>
    %24 = vector.broadcast %23 : vector<1x256xf32> to vector<8x256xf32>
    %25 = arith.mulf %22, %24 : vector<8x256xf32>
    %cst_14 = arith.constant dense<0.000000e+00> : vector<8xf32>
    %26 = vector.multi_reduction <add>, %25, %cst_14 [1] : vector<8x256xf32> to vector<8xf32>
    %27 = vector.shape_cast %26 : vector<8xf32> to vector<8x1xf32>
    %c0_15 = arith.constant 0 : index
    %c0_16 = arith.constant 0 : index
    %28 = vector.load %arg7[%c0_15, %c0_16] : memref<1x1xf32, #tpu.memory_space<vmem>>, vector<1x1xf32>
    %29 = vector.broadcast %28 : vector<1x1xf32> to vector<8x1xf32>
    %30 = arith.addf %27, %29 : vector<8x1xf32>
    %31 = arith.negf %30 : vector<8x1xf32>
    %32 = math.exp %31 : vector<8x1xf32>
    %cst_17 = arith.constant 1.000000e+00 : f32
    %33 = vector.broadcast %cst_17 : f32 to vector<8x1xf32>
    %34 = arith.addf %33, %32 : vector<8x1xf32>
    %35 = arith.divf %33, %34 : vector<8x1xf32>
    %36 = vector.shape_cast %35 : vector<8x1xf32> to vector<8x1xf32>
    %37 = vector.broadcast %36 : vector<8x1xf32> to vector<8x128xf32>
    %c0_18 = arith.constant 0 : index
    %c0_19 = arith.constant 0 : index
    %38 = vector.load %arg8[%c0_18, %c0_19] : memref<8x128xf32, #tpu.memory_space<vmem>>, vector<8x128xf32>
    tpu.vector_store %arg8[%c0_18, %c0_19], %37 {strides = array<i32>} : memref<8x128xf32, #tpu.memory_space<vmem>>, vector<8x128xf32>,
    return
  }
  func.func @transform_0(%arg0: i32) -> (i32, i32) {
    %c0_i32 = arith.constant 0 : i32
    %c0_i32_0 = arith.constant 0 : i32
    return %arg0, %c0_i32 : i32, i32
  }
  func.func @transform_1(%arg0: i32) -> (i32, i32) {
    %c0_i32 = arith.constant 0 : i32
    %c0_i32_0 = arith.constant 0 : i32
    %c0_i32_1 = arith.constant 0 : i32
    return %c0_i32, %c0_i32_0 : i32, i32
  }
  func.func @transform_2(%arg0: i32) -> (i32, i32) {
    %c0_i32 = arith.constant 0 : i32
    %c0_i32_0 = arith.constant 0 : i32
    %c0_i32_1 = arith.constant 0 : i32
    return %c0_i32, %c0_i32_0 : i32, i32
  }
  func.func @transform_3(%arg0: i32) -> (i32, i32) {
    %c0_i32 = arith.constant 0 : i32
    %c0_i32_0 = arith.constant 0 : i32
    %c0_i32_1 = arith.constant 0 : i32
    return %c0_i32, %c0_i32_0 : i32, i32
  }
  func.func @transform_4(%arg0: i32) -> (i32, i32) {
    %c0_i32 = arith.constant 0 : i32
    %c0_i32_0 = arith.constant 0 : i32
    %c0_i32_1 = arith.constant 0 : i32
    return %c0_i32, %c0_i32_0 : i32, i32
  }
  func.func @transform_5(%arg0: i32) -> (i32, i32) {
    %c0_i32 = arith.constant 0 : i32
    %c0_i32_0 = arith.constant 0 : i32
    %c0_i32_1 = arith.constant 0 : i32
    return %c0_i32, %c0_i32_0 : i32, i32
  }
  func.func @transform_6(%arg0: i32) -> (i32, i32) {
    %c0_i32 = arith.constant 0 : i32
    %c0_i32_0 = arith.constant 0 : i32
    %c0_i32_1 = arith.constant 0 : i32
    return %c0_i32, %c0_i32_0 : i32, i32
  }
  func.func @transform_7(%arg0: i32) -> (i32, i32) {
    %c0_i32 = arith.constant 0 : i32
    %c0_i32_0 = arith.constant 0 : i32
    return %arg0, %c0_i32 : i32, i32
  }
}

</mosaic_0001>

<bundles_post_ra>
// kernel: tpu_custom_call.1
= control target key start
LH: loop header
LB: loop body
LE: loop exit
PB: predicated region body
PF: predicated region fallthrough
CT: control target
= control target key end

     0   :  { %s1656_s0 = inlined_call_operand.hbm [shape: f32[8,768], index: 0, kind: input, shape index: {}]   ;;  %s1657_s1 = inlined_call_operand.hbm [shape: bf16[768,256], index: 1, kind: input, shape index: {}]   ;;  %s1658_s2 = inlined_call_operand.vmem [shape: f32[1,256], index: 2, kind: input, shape index: {}]   ;;  %s1659_s3 = inlined_call_operand.hbm [shape: bf16[256,256], index: 3, kind: input, shape index: {}]   ;;  %s1660_s4 = inlined_call_operand.vmem [shape: f32[1,256], index: 4, kind: input, shape index: {}]   ;;  %s1661_s5 = inlined_call_operand.vmem [shape: f32[1,256], index: 5, kind: input, shape index: {}]   ;;  %s1662_s6 = inlined_call_operand.<no memory space> [shape: f32[1,1], index: 6, kind: input, shape index: {}]   ;;  %s1663_s7 = inlined_call_operand.hbm [shape: f32[8,128], index: 7, kind: output, shape index: {}]  }
   0x1   :  { %v12_v0 = vstv %s1662_s6 }
   0x2   :  { %13 = vst [vmem:[#allocation2] sm:$0x1] %v12_v0 }
   0x3   :  { %14 = vsyncpa [#allocation4], 0 }
   0x4   :  { %15 = vsyncpa [#allocation7], 0 }
   0x5   :  { %16 = vsyncpa [#allocation5], 0  ;;  %s1547_s26 = smov [#allocation6]  }
   0x6   :  { %s32_s27 = sshll.u32 %s1547_s26, 4  ;;  %s33_s27 = int_to_ptr.vmem [resolvable:$true] %s32_s27 }
   0x7   :  { %s1469_s28 = scalar_lea.vmem %s33_s27, 12288  ;;  %p1474_p1 = scmp.lt.s32.totalorder %s33_s27, %s33_s27 }
   0x8   :  { %p1470_p0 = scmp.ne.s32.totalorder %s33_s27, %s1469_s28  ;;  %p1475_p2 = scmp.lt.s32.totalorder %s1469_s28, %s1469_s28 }
   0xa   :  { %p1476_p3 = por %p1475_p2, %p1474_p1 }
   0xc   :  { %p1477_p4 = pnand %p1476_p3, %p1470_p0 }
   0xe   :  { %1480 = shalt.err (!%p1477_p4)
}
   0xf   :  { %s1548_s29 = smov 128   ;;  %s1549_s30 = smov 8  }
  0x10   :  { %38 = dma.hbm_to_vmem [thread:$0]  %s1657_s1, 12288, %s33_s27, [#allocation7], %s1548_s29, %s1548_s29, %s1549_s30  }
  0x11   :  { %s1550_s6 = smov [#allocation3]   ;;  %s1551_s11 = smov [#allocation8]  }
  0x12   :  { %s23_s10 = sshll.u32 %s1550_s6, 4  ;;  %s46_s12 = sshll.u32 %s1551_s11, 4  ;;  %s24_s10 = int_to_ptr.vmem [resolvable:$true] %s23_s10  ;;  %s47_s12 = int_to_ptr.vmem [resolvable:$true] %s46_s12 }
  0x13   :  { %s1489_s13 = scalar_lea.vmem %s24_s10, 768  ;;  %p1494_p6 = scmp.lt.s32.totalorder %s24_s10, %s24_s10 }
  0x14   :  { %p1490_p5 = scmp.ne.s32.totalorder %s24_s10, %s1489_s13  ;;  %p1495_p7 = scmp.lt.s32.totalorder %s1489_s13, %s1489_s13 }
  0x16   :  { %p1496_p8 = por %p1495_p7, %p1494_p6 }
  0x18   :  { %p1497_p9 = pnand %p1496_p8, %p1490_p5 }
  0x1a   :  { %1500 = shalt.err (!%p1497_p9)
}
  0x1b   :  { %26 = dma.hbm_to_vmem [thread:$0]  %s1656_s0, 768, %s24_s10, [#allocation4]  }
  0x1c   :  { %s1509_s16 = scalar_lea.vmem %s47_s12, 4096  ;;  %p1514_p11 = scmp.lt.s32.totalorder %s47_s12, %s47_s12 }
  0x1d   :  { %p1510_p10 = scmp.ne.s32.totalorder %s47_s12, %s1509_s16  ;;  %p1515_p12 = scmp.lt.s32.totalorder %s1509_s16, %s1509_s16 }
  0x1f   :  { %p1516_p13 = por %p1515_p12, %p1514_p11 }
  0x21   :  { %p1517_p0 = pnand %p1516_p13, %p1510_p10 }
  0x23   :  { %1520 = shalt.err (!%p1517_p0)
}
  0x24   :  { %52 = dma.hbm_to_vmem [thread:$0]  %s1659_s3, 4096, %s47_s12, [#allocation7], %s1548_s29, %s1548_s29, %s1549_s30  }
  0x25   :  { %1541 = dma.done.wait [#allocation4], 768  }
  0x26   :  { %1542 = vsyncadd [#allocation4], 4294966528 }
  0x27   :  { %1543 = dma.done.wait [#allocation7], 16384  }
  0x28   :  { %1544 = vsyncadd [#allocation7], 4294950912  ;;  %v1606_v1 = vld [vmem:[#allocation3] sm:$0xff]  ;;  %v1608_v2 = vld [vmem:[#allocation3 + $0x8] sm:$0xff] }
  0x29   :  { %v1610_v3 = vld [vmem:[#allocation3 + $0x10] sm:$0xff]  ;;  %v1612_v4 = vld [vmem:[#allocation3 + $0x18] sm:$0xff]  ;;  %v1614_v5 = vld [vmem:[#allocation3 + $0x20] sm:$0xff]  ;;  %v74_v6 = vmul.f32 %v1606_v1, %v1606_v1  ;;  %v75_v7 = vmul.f32 %v1608_v2, %v1608_v2 }
  0x2a   :  { %v76_v8 = vmul.f32 %v1610_v3, %v1610_v3  ;;  %v1622_v9 = vld [vmem:[#allocation3 + $0x28] sm:$0xff]  ;;  %v77_v11 = vmul.f32 %v1612_v4, %v1612_v4  ;;  %v78_v16 = vmul.f32 %v1614_v5, %v1614_v5  ;;  %v1261_v18 = vld [vmem:[#allocation6 + $0x64] ss:$8 sps:$4 sm:$0xff]   ;;  %v1263_v19 = vld [vmem:[#allocation6 + $0x60] ss:$8 sps:$4 sm:$0xff]  }
  0x2b   :  { %v1255_v10 = vld [vmem:[#allocation6 + $0x74] ss:$8 sps:$4 sm:$0xff]   ;;  %v80_v12 = vadd.f32 %v75_v7, %v74_v6  ;;  %v1257_v13 = vld [vmem:[#allocation6 + $0x70] ss:$8 sps:$4 sm:$0xff]   ;;  %v1264_v20 = vld [vmem:[#allocation6 + $0x164] ss:$8 sps:$4 sm:$0xff]   ;;  %v79_v21 = vmul.f32 %v1622_v9, %v1622_v9 }
  0x2c   :  { %689 = vmatprep.subr.bf16.mxu0 %v1255_v10  ;;  %v1258_v14 = vld [vmem:[#allocation6 + $0x174] ss:$8 sps:$4 sm:$0xff]   ;;  %v1260_v15 = vld [vmem:[#allocation6 + $0x170] ss:$8 sps:$4 sm:$0xff]   ;;  %v1266_v23 = vld [vmem:[#allocation6 + $0x160] ss:$8 sps:$4 sm:$0xff]  }
  0x2d   :  { %v81_v17 = vadd.f32 %v80_v12, %v76_v8  ;;  %690 = vmatpush1.bf16.msra.mxu0 %v1257_v13  ;;  %730 = vmatprep.subr.bf16.mxu1 %v1258_v14  ;;  %v1267_v24 = vld [vmem:[#allocation6 + $0x54] ss:$8 sps:$4 sm:$0xff]   ;;  %v1269_v26 = vld [vmem:[#allocation6 + $0x50] ss:$8 sps:$4 sm:$0xff]   ;;  %v1273_v28 = vld [vmem:[#allocation6 + $0x44] ss:$8 sps:$4 sm:$0xff]  }
  0x2e   :  { %731 = vmatpush1.bf16.msra.mxu1 %v1260_v15  ;;  %691 = vmatprep.subr.bf16.mxu0 %v1261_v18  ;;  %v1270_v27 = vld [vmem:[#allocation6 + $0x154] ss:$8 sps:$4 sm:$0xff]   ;;  %v1272_v30 = vld [vmem:[#allocation6 + $0x150] ss:$8 sps:$4 sm:$0xff]   ;;  %v1276_v31 = vld [vmem:[#allocation6 + $0x144] ss:$8 sps:$4 sm:$0xff]  }
  0x2f   :  { %v82_v22 = vadd.f32 %v81_v17, %v77_v11  ;;  %732 = vmatprep.subr.bf16.mxu1 %v1264_v20  ;;  %v1275_v32 = vld [vmem:[#allocation6 + $0x40] ss:$8 sps:$4 sm:$0xff]   ;;  %v1279_v33 = vld [vmem:[#allocation6 + $0x34] ss:$8 sps:$4 sm:$0xff]   ;;  %v1281_v36 = vld [vmem:[#allocation6 + $0x30] ss:$8 sps:$4 sm:$0xff]  }
  0x30   :  { %v1278_v34 = vld [vmem:[#allocation6 + $0x140] ss:$8 sps:$4 sm:$0xff]   ;;  %v1282_v35 = vld [vmem:[#allocation6 + $0x134] ss:$8 sps:$4 sm:$0xff]   ;;  %v1285_v37 = vld [vmem:[#allocation6 + $0x24] ss:$8 sps:$4 sm:$0xff]  }
  0x31   :  { %v83_v25 = vadd.f32 %v82_v22, %v78_v16  ;;  %692 = vmatpush1.bf16.msra.mxu0 %v1263_v19  ;;  %v1284_v38 = vld [vmem:[#allocation6 + $0x130] ss:$8 sps:$4 sm:$0xff]   ;;  %v1288_v39 = vld [vmem:[#allocation6 + $0x124] ss:$8 sps:$4 sm:$0xff]   ;;  %v1287_v40 = vld [vmem:[#allocation6 + $0x20] ss:$8 sps:$4 sm:$0xff]  }
  0x32   :  { %693 = vmatprep.subr.bf16.mxu0 %v1267_v24  ;;  %733 = vmatpush1.bf16.msra.mxu1 %v1266_v23  ;;  %v1291_v41 = vld [vmem:[#allocation6 + $0x14] ss:$8 sps:$4 sm:$0xff]   ;;  %v1290_v42 = vld [vmem:[#allocation6 + $0x120] ss:$8 sps:$4 sm:$0xff]   ;;  %v1293_v44 = vld [vmem:[#allocation6 + $0x10] ss:$8 sps:$4 sm:$0xff]  }
  0x33   :  { %v84_v29 = vadd.f32 %v83_v25, %v79_v21  ;;  %734 = vmatprep.subr.bf16.mxu1 %v1270_v27  ;;  %v1294_v43 = vld [vmem:[#allocation6 + $0x114] ss:$8 sps:$4 sm:$0xff]   ;;  %v1297_v45 = vld [vmem:[#allocation6 + $0x4] ss:$8 sps:$4 sm:$0xff]   ;;  %v1296_v46 = vld [vmem:[#allocation6 + $0x110] ss:$8 sps:$4 sm:$0xff]  }
  0x34   :  { %v1300_v47 = vld [vmem:[#allocation6 + $0x104] ss:$8 sps:$4 sm:$0xff]   ;;  %v1299_v48 = vld [vmem:[#allocation6] ss:$8 sps:$4 sm:$0xff]   ;;  %v1303_v49 = vld [vmem:[#allocation6 + $0xf4] ss:$8 sps:$4 sm:$0xff]  }
  0x35   :  { %85 = vadd.xlane.f32.xlu0 %v84_v29  ;;  %694 = vmatpush1.bf16.msra.mxu0 %v1269_v26  ;;  %v1302_v50 = vld [vmem:[#allocation6 + $0x100] ss:$8 sps:$4 sm:$0xff]   ;;  %v1306_v51 = vld [vmem:[#allocation6 + $0x1f4] ss:$8 sps:$4 sm:$0xff]   ;;  %v1305_v52 = vld [vmem:[#allocation6 + $0xf0] ss:$8 sps:$4 sm:$0xff]  }
  0x36   :  { %695 = vmatprep.subr.bf16.mxu0 %v1273_v28  ;;  %735 = vmatpush1.bf16.msra.mxu1 %v1272_v30  ;;  %v1309_v53 = vld [vmem:[#allocation6 + $0xe4] ss:$8 sps:$4 sm:$0xff]   ;;  %v1308_v54 = vld [vmem:[#allocation6 + $0x1f0] ss:$8 sps:$4 sm:$0xff]   ;;  %v1311_v56 = vld [vmem:[#allocation6 + $0xe0] ss:$8 sps:$4 sm:$0xff]  }
  0x37   :  { %736 = vmatprep.subr.bf16.mxu1 %v1276_v31  ;;  %v1312_v55 = vld [vmem:[#allocation6 + $0x1e4] ss:$8 sps:$4 sm:$0xff]   ;;  %v1315_v57 = vld [vmem:[#allocation6 + $0xd4] ss:$8 sps:$4 sm:$0xff]   ;;  %v1314_v58 = vld [vmem:[#allocation6 + $0x1e0] ss:$8 sps:$4 sm:$0xff]  }
  0x38   :  { %v1318_v59 = vld [vmem:[#allocation6 + $0x1d4] ss:$8 sps:$4 sm:$0xff]   ;;  %v1317_v60 = vld [vmem:[#allocation6 + $0xd0] ss:$8 sps:$4 sm:$0xff]   ;;  %v1321_v61 = vld [vmem:[#allocation6 + $0xc4] ss:$8 sps:$4 sm:$0xff]  }
  0x39   :  { %696 = vmatpush1.bf16.msra.mxu0 %v1275_v32  ;;  %v1320_v62 = vld [vmem:[#allocation6 + $0x1d0] ss:$8 sps:$4 sm:$0xff]   ;;  %v1324_v63 = vld [vmem:[#allocation6 + $0x1c4] ss:$8 sps:$4 sm:$0xff]   ;;  %v1323_v0 = vld [vmem:[#allocation6 + $0xc0] ss:$8 sps:$4 sm:$0xff]  }
  0x3a   :  { %697 = vmatprep.subr.bf16.mxu0 %v1279_v33  ;;  %737 = vmatpush1.bf16.msra.mxu1 %v1278_v34  ;;  %v1326_v6 = vld [vmem:[#allocation6 + $0x1c0] ss:$8 sps:$4 sm:$0xff]   ;;  %v1327_v7 = vld [vmem:[#allocation6 + $0xb4] ss:$8 sps:$4 sm:$0xff]   ;;  %v1329_v8 = vld [vmem:[#allocation6 + $0xb0] ss:$8 sps:$4 sm:$0xff]  }
  0x3b   :  { %738 = vmatprep.subr.bf16.mxu1 %v1282_v35  ;;  %v1330_v10 = vld [vmem:[#allocation6 + $0x1b4] ss:$8 sps:$4 sm:$0xff]   ;;  %v1332_v11 = vld [vmem:[#allocation6 + $0x1b0] ss:$8 sps:$4 sm:$0xff]   ;;  %v1333_v12 = vld [vmem:[#allocation6 + $0xa4] ss:$8 sps:$4 sm:$0xff]  }
  0x3c   :  { %v1336_v13 = vld [vmem:[#allocation6 + $0x1a4] ss:$8 sps:$4 sm:$0xff]   ;;  %v1335_v14 = vld [vmem:[#allocation6 + $0xa0] ss:$8 sps:$4 sm:$0xff]   ;;  %v1339_v16 = vld [vmem:[#allocation6 + $0x94] ss:$8 sps:$4 sm:$0xff]  }
  0x3d   :  { %698 = vmatpush1.bf16.msra.mxu0 %v1281_v36  ;;  %v1338_v15 = vld [vmem:[#allocation6 + $0x1a0] ss:$8 sps:$4 sm:$0xff]   ;;  %v1342_v17 = vld [vmem:[#allocation6 + $0x194] ss:$8 sps:$4 sm:$0xff]   ;;  %v1341_v18 = vld [vmem:[#allocation6 + $0x90] ss:$8 sps:$4 sm:$0xff]  }
  0x3e   :  { %699 = vmatprep.subr.bf16.mxu0 %v1285_v37  ;;  %739 = vmatpush1.bf16.msra.mxu1 %v1284_v38  ;;  %v1344_v19 = vld [vmem:[#allocation6 + $0x190] ss:$8 sps:$4 sm:$0xff]   ;;  %v1345_v20 = vld [vmem:[#allocation6 + $0x84] ss:$8 sps:$4 sm:$0xff]   ;;  %v1347_v22 = vld [vmem:[#allocation6 + $0x80] ss:$8 sps:$4 sm:$0xff]  }
  0x3f   :  { %740 = vmatprep.subr.bf16.mxu1 %v1288_v39  ;;  %v1348_v21 = vld [vmem:[#allocation6 + $0x184] ss:$8 sps:$4 sm:$0xff]   ;;  %v1350_v23 = vld [vmem:[#allocation6 + $0x180] ss:$8 sps:$4 sm:$0xff]   ;;  %v1353_v24 = vld [vmem:[#allocation6 + $0x274] ss:$8 sps:$4 sm:$0xff]  }
  0x40   :  { %v1351_v35 = vld [vmem:[#allocation6 + $0x270] ss:$8 sps:$4 sm:$0xff]   ;;  %v1356_v38 = vld [vmem:[#allocation6 + $0x264] ss:$8 sps:$4 sm:$0xff]   ;;  %v1360_v39 = vld [vmem:[#allocation6 + $0x240] ss:$8 sps:$4 sm:$0xff]  }
  0x41   :  { %700 = vmatpush1.bf16.msra.mxu0 %v1287_v40  ;;  %v1365_v40 = vld [vmem:[#allocation6 + $0x234] ss:$8 sps:$4 sm:$0xff]  }
  0x42   :  { %701 = vmatprep.subr.bf16.mxu0 %v1291_v41  ;;  %741 = vmatpush1.bf16.msra.mxu1 %v1290_v42  ;;  %v1363_v41 = vld [vmem:[#allocation6 + $0x230] ss:$8 sps:$4 sm:$0xff]   ;;  %v1368_v42 = vld [vmem:[#allocation6 + $0x224] ss:$8 sps:$4 sm:$0xff]  }
  0x43   :  { %742 = vmatprep.subr.bf16.mxu1 %v1294_v43  ;;  %v1366_v43 = vld [vmem:[#allocation6 + $0x220] ss:$8 sps:$4 sm:$0xff]  }
  0x45   :  { %702 = vmatpush1.bf16.msra.mxu0 %v1293_v44  ;;  %v1371_v44 = vld [vmem:[#allocation6 + $0x214] ss:$8 sps:$4 sm:$0xff]  }
  0x46   :  { %703 = vmatprep.subr.bf16.mxu0 %v1297_v45  ;;  %743 = vmatpush1.bf16.msra.mxu1 %v1296_v46  ;;  %v1369_v45 = vld [vmem:[#allocation6 + $0x210] ss:$8 sps:$4 sm:$0xff]   ;;  %v1374_v46 = vld [vmem:[#allocation6 + $0x204] ss:$8 sps:$4 sm:$0xff]  }
  0x47   :  { %744 = vmatprep.subr.bf16.mxu1 %v1300_v47  ;;  %v1372_v47 = vld [vmem:[#allocation6 + $0x200] ss:$8 sps:$4 sm:$0xff]  }
  0x49   :  { %704 = vmatpush1.bf16.msra.mxu0 %v1299_v48  ;;  %v1377_v48 = vld [vmem:[#allocation6 + $0x2f4] ss:$8 sps:$4 sm:$0xff]  }
  0x4a   :  { %705 = vmatprep.subr.bf16.mxu0 %v1303_v49  ;;  %745 = vmatpush1.bf16.msra.mxu1 %v1302_v50  ;;  %v1375_v49 = vld [vmem:[#allocation6 + $0x2f0] ss:$8 sps:$4 sm:$0xff]   ;;  %v1380_v50 = vld [vmem:[#allocation6 + $0x2e4] ss:$8 sps:$4 sm:$0xff]  }
  0x4b   :  { %746 = vmatprep.subr.bf16.mxu1 %v1306_v51  ;;  %v1378_v51 = vld [vmem:[#allocation6 + $0x2e0] ss:$8 sps:$4 sm:$0xff]  }
  0x4d   :  { %706 = vmatpush2.bf16.msra.mxu0 %v1305_v52  ;;  %v1383_v52 = vld [vmem:[#allocation6 + $0x2d4] ss:$8 sps:$4 sm:$0xff]  }
  0x4e   :  { %707 = vmatprep.subr.bf16.mxu0 %v1309_v53  ;;  %747 = vmatpush2.bf16.msra.mxu1 %v1308_v54  ;;  %v1381_v53 = vld [vmem:[#allocation6 + $0x2d0] ss:$8 sps:$4 sm:$0xff]   ;;  %v1386_v54 = vld [vmem:[#allocation6 + $0x2c4] ss:$8 sps:$4 sm:$0xff]  }
  0x4f   :  { %748 = vmatprep.subr.bf16.mxu1 %v1312_v55  ;;  %v1384_v55 = vld [vmem:[#allocation6 + $0x2c0] ss:$8 sps:$4 sm:$0xff]  }
  0x51   :  { %708 = vmatpush2.bf16.msra.mxu0 %v1311_v56  ;;  %v1389_v56 = vld [vmem:[#allocation6 + $0x2b4] ss:$8 sps:$4 sm:$0xff]  }
  0x52   :  { %709 = vmatprep.subr.bf16.mxu0 %v1315_v57  ;;  %749 = vmatpush2.bf16.msra.mxu1 %v1314_v58  ;;  %v1387_v57 = vld [vmem:[#allocation6 + $0x2b0] ss:$8 sps:$4 sm:$0xff]   ;;  %v1392_v58 = vld [vmem:[#allocation6 + $0x2a4] ss:$8 sps:$4 sm:$0xff]  }
  0x53   :  { %750 = vmatprep.subr.bf16.mxu1 %v1318_v59  ;;  %v1390_v59 = vld [vmem:[#allocation6 + $0x2a0] ss:$8 sps:$4 sm:$0xff]  }
  0x55   :  { %710 = vmatpush2.bf16.msra.mxu0 %v1317_v60  ;;  %v1395_v60 = vld [vmem:[#allocation6 + $0x294] ss:$8 sps:$4 sm:$0xff]  }
  0x56   :  { %711 = vmatprep.subr.bf16.mxu0 %v1321_v61  ;;  %751 = vmatpush2.bf16.msra.mxu1 %v1320_v62  ;;  %v1393_v61 = vld [vmem:[#allocation6 + $0x290] ss:$8 sps:$4 sm:$0xff]   ;;  %v1398_v62 = vld [vmem:[#allocation6 + $0x284] ss:$8 sps:$4 sm:$0xff]  }
  0x57   :  { %752 = vmatprep.subr.bf16.mxu1 %v1324_v63  ;;  %v1396_v63 = vld [vmem:[#allocation6 + $0x280] ss:$8 sps:$4 sm:$0xff]  }
  0x59   :  { %712 = vmatpush2.bf16.msra.mxu0 %v1323_v0 }
  0x5a   :  { %713 = vmatprep.subr.bf16.mxu0 %v1327_v7  ;;  %753 = vmatpush2.bf16.msra.mxu1 %v1326_v6  ;;  %v1399_v7 = vld [vmem:[#allocation8 + $0x70] ss:$8 sps:$4 sm:$0xff]  }
  0x5b   :  { %754 = vmatprep.subr.bf16.mxu1 %v1330_v10  ;;  %v1404_v10 = vld [vmem:[#allocation8 + $0x64] ss:$8 sps:$4 sm:$0xff]  }
  0x5d   :  { %714 = vmatpush2.bf16.msra.mxu0 %v1329_v8  ;;  %v1401_v8 = vld [vmem:[#allocation8 + $0x74] ss:$8 sps:$4 sm:$0xff]  }
  0x5e   :  { %715 = vmatprep.subr.bf16.mxu0 %v1333_v12  ;;  %755 = vmatpush2.bf16.msra.mxu1 %v1332_v11  ;;  %v1402_v11 = vld [vmem:[#allocation8 + $0x60] ss:$8 sps:$4 sm:$0xff]   ;;  %v1407_v12 = vld [vmem:[#allocation8 + $0x54] ss:$8 sps:$4 sm:$0xff]  }
  0x5f   :  { %756 = vmatprep.subr.bf16.mxu1 %v1336_v13  ;;  %v1405_v13 = vld [vmem:[#allocation8 + $0x50] ss:$8 sps:$4 sm:$0xff]  }
  0x61   :  { %716 = vmatpush2.bf16.msra.mxu0 %v1335_v14  ;;  %v1410_v14 = vld [vmem:[#allocation8 + $0x44] ss:$8 sps:$4 sm:$0xff]  }
  0x62   :  { %717 = vmatprep.subr.bf16.mxu0 %v1339_v16  ;;  %757 = vmatpush2.bf16.msra.mxu1 %v1338_v15  ;;  %v1408_v15 = vld [vmem:[#allocation8 + $0x40] ss:$8 sps:$4 sm:$0xff]   ;;  %v1413_v16 = vld [vmem:[#allocation8 + $0x34] ss:$8 sps:$4 sm:$0xff]  }
  0x63   :  { %758 = vmatprep.subr.bf16.mxu1 %v1342_v17  ;;  %v1416_v17 = vld [vmem:[#allocation8 + $0x24] ss:$8 sps:$4 sm:$0xff]  }
  0x65   :  { %718 = vmatpush2.bf16.msra.mxu0 %v1341_v18  ;;  %v1414_v18 = vld [vmem:[#allocation8 + $0x20] ss:$8 sps:$4 sm:$0xff]  }
  0x66   :  { %719 = vmatprep.subr.bf16.mxu0 %v1345_v20  ;;  %759 = vmatpush2.bf16.msra.mxu1 %v1344_v19  ;;  %v1419_v19 = vld [vmem:[#allocation8 + $0x14] ss:$8 sps:$4 sm:$0xff]   ;;  %v1417_v20 = vld [vmem:[#allocation8 + $0x10] ss:$8 sps:$4 sm:$0xff]  }
  0x67   :  { %760 = vmatprep.subr.bf16.mxu1 %v1348_v21  ;;  %v1422_v21 = vld [vmem:[#allocation8 + $0x4] ss:$8 sps:$4 sm:$0xff]  }
  0x69   :  { %720 = vmatpush2.bf16.msra.mxu0 %v1347_v22  ;;  %v1420_v22 = vld [vmem:[#allocation8] ss:$8 sps:$4 sm:$0xff]  }
  0x6a   :  { %771 = vmatprep.subr.bf16.mxu0 %v1353_v24  ;;  %761 = vmatpush2.bf16.msra.mxu1 %v1350_v23  ;;  %v1425_v23 = vld [vmem:[#allocation8 + $0xf4] ss:$8 sps:$4 sm:$0xff]   ;;  %v1423_v24 = vld [vmem:[#allocation8 + $0xf0] ss:$8 sps:$4 sm:$0xff]  }
  0x6b   :  { %1020 = vmatprep.subr.bf16.mxu1 %v1401_v8 }
  0xbe   :  { %v86_v25 = vpop.xlane.xlu0 %85 }
  0xbf   :  { %v87_v26 = vmax.f32 %v86_v25, 1e-24  ;;  %v1428_v25 = vld [vmem:[#allocation8 + $0xe4] ss:$8 sps:$4 sm:$0xff]  }
  0xc1   :  { %1447 = vrsqrt.f32 %v87_v26  ;;  %v1426_v26 = vld [vmem:[#allocation8 + $0xe0] ss:$8 sps:$4 sm:$0xff]  }
  0xce   :  { %v1630_v27 = vpop.eup %1447 }
  0xcf   :  { %v90_v28 = vmul.f32 %v1630_v27, %v1608_v2  ;;  %v92_v29 = vmul.f32 %v1630_v27, %v1612_v4  ;;  %v89_v30 = vmul.f32 %v1630_v27, %v1606_v1  ;;  %v91_v31 = vmul.f32 %v1630_v27, %v1610_v3  ;;  %v1354_v1 = vld [vmem:[#allocation6 + $0x260] ss:$8 sps:$4 sm:$0xff]   ;;  %v1359_v4 = vld [vmem:[#allocation6 + $0x254] ss:$8 sps:$4 sm:$0xff]   ;;  %v1357_v3 = vld [vmem:[#allocation6 + $0x250] ss:$8 sps:$4 sm:$0xff]  }
  0xd0   :  { %v94_v32 = vmul.f32 %v1630_v27, %v1622_v9  ;;  %v1362_v9 = vld [vmem:[#allocation6 + $0x244] ss:$8 sps:$4 sm:$0xff]   ;;  %v93_v0 = vmul.f32 %v1630_v27, %v1614_v5  ;;  %v1411_v5 = vld [vmem:[#allocation8 + $0x30] ss:$8 sps:$4 sm:$0xff]   ;;  %v1431_v27 = vld [vmem:[#allocation8 + $0xd4] ss:$8 sps:$4 sm:$0xff]  }
  0xd1   :  { %v96_v33 = vpack.c.bf16 %v90_v28, %v90_v28  ;;  %v98_v34 = vpack.c.bf16 %v92_v29, %v92_v29  ;;  %v95_v36 = vpack.c.bf16 %v89_v30, %v89_v30  ;;  %v97_v37 = vpack.c.bf16 %v91_v31, %v91_v31  ;;  %v1429_v28 = vld [vmem:[#allocation8 + $0xd0] ss:$8 sps:$4 sm:$0xff]   ;;  %v1434_v29 = vld [vmem:[#allocation8 + $0xc4] ss:$8 sps:$4 sm:$0xff]   ;;  %v1432_v30 = vld [vmem:[#allocation8 + $0xc0] ss:$8 sps:$4 sm:$0xff]  }
  0xd2   :  { %v100_v2 = vpack.c.bf16 %v94_v32, %v94_v32  ;;  %v99_v6 = vpack.c.bf16 %v93_v0, %v93_v0  ;;  %v1437_v31 = vld [vmem:[#allocation8 + $0xb4] ss:$8 sps:$4 sm:$0xff]   ;;  %v1435_v32 = vld [vmem:[#allocation8 + $0xb0] ss:$8 sps:$4 sm:$0xff]  }
  0xd3   :  { %721 = vmatprep.mubr.bf16.mxu0 %v96_v33  ;;  %762 = vmatprep.mubr.bf16.mxu1 %v98_v34  ;;  %v1440_v33 = vld [vmem:[#allocation8 + $0xa4] ss:$8 sps:$4 sm:$0xff]   ;;  %v1438_v34 = vld [vmem:[#allocation8 + $0xa0] ss:$8 sps:$4 sm:$0xff]  }
  0xd4   :  { %722 = vmatmul.mubr.bf16.vlgmr.msra.gmra.mxu0 %v95_v36  ;;  %763 = vmatmul.mubr.bf16.vlgmr.msra.gmra.mxu1 %v97_v37  ;;  %v1441_v36 = vld [vmem:[#allocation8 + $0x90] ss:$8 sps:$4 sm:$0xff]   ;;  %v1446_v37 = vld [vmem:[#allocation8 + $0x84] ss:$8 sps:$4 sm:$0xff]  }
  0xd5   :  { %772 = vmatpush1.bf16.msra.mxu0 %v1351_v35  ;;  %803 = vmatprep.mubr.bf16.mxu0 %v100_v2  ;;  %v1443_v35 = vld [vmem:[#allocation8 + $0x94] ss:$8 sps:$4 sm:$0xff]  }
  0xd6   :  { %773 = vmatprep.subr.bf16.mxu0 %v1356_v38  ;;  %1021 = vmatpush1.bf16.msra.mxu1 %v1399_v7  ;;  %v1444_v38 = vld [vmem:[#allocation8 + $0x80] ss:$8 sps:$4 sm:$0xff]  }
  0xd7   :  { %1022 = vmatprep.subr.bf16.mxu1 %v1404_v10 }
  0xd9   :  { %774 = vmatpush1.bf16.msra.mxu0 %v1354_v1 }
  0xda   :  { %775 = vmatprep.subr.bf16.mxu0 %v1359_v4  ;;  %1023 = vmatpush1.bf16.msra.mxu1 %v1402_v11 }
  0xdb   :  { %1024 = vmatprep.subr.bf16.mxu1 %v1407_v12 }
  0xdd   :  { %776 = vmatpush1.bf16.msra.mxu0 %v1357_v3 }
  0xde   :  { %777 = vmatprep.subr.bf16.mxu0 %v1362_v9  ;;  %1025 = vmatpush1.bf16.msra.mxu1 %v1405_v13 }
  0xdf   :  { %1026 = vmatprep.subr.bf16.mxu1 %v1410_v14  ;;  %v1063_v14 = vld [vmem:[%s1661_s5] sm:$0x3] }
  0xe1   :  { %778 = vmatpush1.bf16.msra.mxu0 %v1360_v39 }
  0xe2   :  { %779 = vmatprep.subr.bf16.mxu0 %v1365_v40  ;;  %1027 = vmatpush1.bf16.msra.mxu1 %v1408_v15 }
  0xe3   :  { %1028 = vmatprep.subr.bf16.mxu1 %v1413_v16 }
  0xe5   :  { %780 = vmatpush1.bf16.msra.mxu0 %v1363_v41 }
  0xe6   :  { %781 = vmatprep.subr.bf16.mxu0 %v1368_v42  ;;  %1029 = vmatpush1.bf16.msra.mxu1 %v1411_v5  ;;  %v199_v42 = vlaneseq }
  0xe7   :  { %1030 = vmatprep.subr.bf16.mxu1 %v1416_v17 }
  0xe9   :  { %782 = vmatpush1.bf16.msra.mxu0 %v1366_v43  ;;  %v200_v43 = vshrl.u32 %v199_v42, 7 }
  0xea   :  { %783 = vmatprep.subr.bf16.mxu0 %v1371_v44  ;;  %1031 = vmatpush1.bf16.msra.mxu1 %v1414_v18 }
  0xeb   :  { %1032 = vmatprep.subr.bf16.mxu1 %v1419_v19  ;;  %v201_v44 = vsub.s32 0, %v200_v43 }
  0xed   :  { %784 = vmatpush1.bf16.msra.mxu0 %v1369_v45  ;;  %v197_v45 = vld [vmem:[%s1658_s2] sm:$0x3]  ;;  %v1068_v15 = vrot.slane %v1063_v14, %v201_v44 }
  0xee   :  { %785 = vmatprep.subr.bf16.mxu0 %v1374_v46  ;;  %1033 = vmatpush1.bf16.msra.mxu1 %v1417_v20  ;;  %v205_v46 = vsub.s32 1, %v200_v43 }
  0xef   :  { %1034 = vmatprep.subr.bf16.mxu1 %v1422_v21  ;;  %v1552_v21 = vmov 0  }
  0xf0   :  { %v1072_v16 = vrot.slane %v1063_v14, %v205_v46  ;;  %1253 = vset.pattern.permute.xlu1 %v1552_v21  ;;  %1254 = vset.pattern.permute.xlu0 %v1552_v21 }
  0xf1   :  { %786 = vmatpush1.bf16.msra.mxu0 %v1372_v47  ;;  %v202_v47 = vrot.slane %v197_v45, %v201_v44 }
  0xf2   :  { %787 = vmatprep.subr.bf16.mxu0 %v1377_v48  ;;  %1035 = vmatpush1.bf16.msra.mxu1 %v1420_v22  ;;  %v206_v48 = vrot.slane %v197_v45, %v205_v46  ;;  %v1244_v22 = vld [vmem:[#allocation2] ss:$0 sm:$0xff] }
  0xf3   :  { %1036 = vmatprep.subr.bf16.mxu1 %v1425_v23 }
  0xf5   :  { %788 = vmatpush2.bf16.msra.mxu0 %v1375_v49 }
  0xf6   :  { %789 = vmatprep.subr.bf16.mxu0 %v1380_v50  ;;  %1037 = vmatpush2.bf16.msra.mxu1 %v1423_v24 }
  0xf7   :  { %1038 = vmatprep.subr.bf16.mxu1 %v1428_v25 }
  0xf9   :  { %790 = vmatpush2.bf16.msra.mxu0 %v1378_v51 }
  0xfa   :  { %791 = vmatprep.subr.bf16.mxu0 %v1383_v52  ;;  %1039 = vmatpush2.bf16.msra.mxu1 %v1426_v26 }
  0xfb   :  { %1040 = vmatprep.subr.bf16.mxu1 %v1431_v27 }
  0xfd   :  { %792 = vmatpush2.bf16.msra.mxu0 %v1381_v53 }
  0xfe   :  { %793 = vmatprep.subr.bf16.mxu0 %v1386_v54  ;;  %1041 = vmatpush2.bf16.msra.mxu1 %v1429_v28 }
  0xff   :  { %1042 = vmatprep.subr.bf16.mxu1 %v1434_v29 }
 0x101   :  { %794 = vmatpush2.bf16.msra.mxu0 %v1384_v55 }
 0x102   :  { %795 = vmatprep.subr.bf16.mxu0 %v1389_v56  ;;  %1043 = vmatpush2.bf16.msra.mxu1 %v1432_v30 }
 0x103   :  { %1044 = vmatprep.subr.bf16.mxu1 %v1437_v31 }
 0x105   :  { %796 = vmatpush2.bf16.msra.mxu0 %v1387_v57 }
 0x106   :  { %797 = vmatprep.subr.bf16.mxu0 %v1392_v58  ;;  %1045 = vmatpush2.bf16.msra.mxu1 %v1435_v32 }
 0x107   :  { %1046 = vmatprep.subr.bf16.mxu1 %v1440_v33 }
 0x109   :  { %798 = vmatpush2.bf16.msra.mxu0 %v1390_v59 }
 0x10a   :  { %799 = vmatprep.subr.bf16.mxu0 %v1395_v60  ;;  %1047 = vmatpush2.bf16.msra.mxu1 %v1438_v34 }
 0x10b   :  { %1048 = vmatprep.subr.bf16.mxu1 %v1443_v35 }
 0x10d   :  { %800 = vmatpush2.bf16.msra.mxu0 %v1393_v61 }
 0x10e   :  { %801 = vmatprep.subr.bf16.mxu0 %v1398_v62  ;;  %1049 = vmatpush2.bf16.msra.mxu1 %v1441_v36 }
 0x10f   :  { %1050 = vmatprep.subr.bf16.mxu1 %v1446_v37 }
 0x111   :  { %802 = vmatpush2.bf16.msra.mxu0 %v1396_v63  ;;  %v848_v63 = vld [vmem:[%s1660_s4] sm:$0x3]  ;;  %s1553_s4 = smov [#allocation9]  }
 0x112   :  { %1051 = vmatpush2.bf16.msra.mxu1 %v1444_v38  ;;  %v853_v0 = vrot.slane %v848_v63, %v201_v44  ;;  %s1106_s5 = sshll.u32 %s1553_s4, 4  ;;  %s1107_s5 = int_to_ptr.vmem [resolvable:$true] %s1106_s5 }
 0x113   :  { %s1521_s21 = scalar_lea.vmem %s1107_s5, 128  ;;  %p1526_p2 = scmp.lt.s32.totalorder %s1107_s5, %s1107_s5 }
 0x114   :  { %804 = vmatmul.mubr.bf16.vlgmr.msra.gmra.mxu0 %v99_v6  ;;  %v857_v6 = vrot.slane %v848_v63, %v205_v46  ;;  %p1522_p1 = scmp.ne.s32.totalorder %s1107_s5, %s1521_s21  ;;  %p1527_p3 = scmp.lt.s32.totalorder %s1521_s21, %s1521_s21 }
 0x116   :  { %p1528_p4 = por %p1527_p3, %p1526_p2 }
 0x118   :  { %p1529_p5 = pnand %p1528_p4, %p1522_p1 }
 0x194   :  { %v723_v2 = vpop.f32.mrf.mxu0  ;;  %v764_v1 = vpop.f32.mrf.mxu1 }
 0x195   :  { %v724_v49 = vadd.f32 %v723_v2, %v202_v47 }
 0x196   :  { %v725_v4 = vpop.f32.mrf.mxu0  ;;  %v766_v3 = vpop.f32.mrf.mxu1 }
 0x197   :  { %v726_v50 = vadd.f32 %v725_v4, %v206_v48  ;;  %v765_v51 = vadd.f32 %v764_v1, %v724_v49 }
 0x198   :  { %v727_v9 = vpop.f32.mrf.mxu0  ;;  %v768_v39 = vpop.f32.mrf.mxu1 }
 0x199   :  { %v767_v53 = vadd.f32 %v766_v3, %v726_v50 }
 0x19a   :  { %v728_v40 = vpop.f32.mrf.mxu0  ;;  %v769_v41 = vpop.f32.mrf.mxu1 }
 0x1d4   :  { %v805_v52 = vpop.f32.mrf.mxu0 }
 0x1d5   :  { %v806_v54 = vadd.f32 %v805_v52, %v765_v51 }
 0x1d6   :  { %v807_v55 = vpop.f32.mrf.mxu0 }
 0x1d7   :  { %v808_v56 = vadd.f32 %v807_v55, %v767_v53  ;;  %1449 = vtanh.f32 %v806_v54 }
 0x1d8   :  { %v809_v57 = vpop.f32.mrf.mxu0 }
 0x1d9   :  { %1451 = vtanh.f32 %v808_v56 }
 0x1da   :  { %v810_v58 = vpop.f32.mrf.mxu0 }
 0x1e4   :  { %v1450_v59 = vpop.eup %1449 }
 0x1e5   :  { %v814_v62 = vpack.c.bf16 %v1450_v59, %v1450_v59 }
 0x1e6   :  { %v1452_v60 = vpop.eup %1451 }
 0x1e7   :  { %v815_v61 = vpack.c.bf16 %v1452_v60, %v1452_v60 }
 0x1e9   :  { %1052 = vmatprep.mubr.bf16.mxu1 %v815_v61 }
 0x1ea   :  { %1053 = vmatmul.mubr.bf16.vlgmr.msra.gmra.mxu1 %v814_v62 }
 0x2aa   :  { %v1054_v7 = vpop.f32.mrf.mxu1 }
 0x2ab   :  { %v1055_v8 = vadd.f32 %v1054_v7, %v853_v0 }
 0x2ac   :  { %v1056_v10 = vpop.f32.mrf.mxu1 }
 0x2ad   :  { %1453 = vtanh.f32 %v1055_v8  ;;  %v1057_v11 = vadd.f32 %v1056_v10, %v857_v6 }
 0x2ae   :  { %v1058_v12 = vpop.f32.mrf.mxu1 }
 0x2af   :  { %1455 = vtanh.f32 %v1057_v11 }
 0x2b0   :  { %v1059_v13 = vpop.f32.mrf.mxu1 }
 0x2ba   :  { %v1454_v5 = vpop.eup %1453 }
 0x2bb   :  { %v1075_v18 = vmul.f32 %v1454_v5, %v1068_v15 }
 0x2bc   :  { %v1456_v17 = vpop.eup %1455 }
 0x2bd   :  { %v1076_v19 = vmul.f32 %v1456_v17, %v1072_v16 }
 0x2bf   :  { %v1077_v20 = vadd.f32 %v1076_v19, %v1075_v18 }
 0x2c1   :  { %1078 = vadd.xlane.f32.xlu0 %v1077_v20 }
 0x34a   :  { %v1079_v23 = vpop.xlane.xlu0 %1078 }
 0x34b   :  { %v1087_v24 = vadd.f32 %v1244_v22, %v1079_v23 }
 0x34d   :  { %v1245_v25 = vmul.f32 -1.442695, %v1087_v24 }
 0x34f   :  { %1457 = vpow2.f32 %v1245_v25 }
 0x35c   :  { %v1458_v26 = vpop.eup %1457 }
 0x35d   :  { %v1091_v27 = vadd.f32 1.0, %v1458_v26 }
 0x35f   :  { %1459 = vrcp.f32 %v1091_v27 }
 0x36c   :  { %v1460_v28 = vpop.eup %1459 }
 0x36d   :  { %1096 = vperm.xlu1 %1253, %v1460_v28  }
 0x3e8   :  { %v1097_v29 = vpop.permute.xlu1 %1096 }
 0x3e9   :  { %1099 = vst [vmem:[#allocation9] sm:$0xff] %v1097_v29 }
 0x3ea   :  { %1532 = shalt.err (!%p1529_p5)
}
 0x3eb   :  { %1109 = dma.vmem_to_hbm [thread:$0]  %s1107_s5, 128, %s1663_s7, [#allocation5]  }
 0x3ec   :  { %1545 = dma.done.wait [#allocation5], 128  }
 0x3ed   :  { %1546 = vsyncadd [#allocation5], 4294967168 }
 0x3ee   :  { %1113 = vsyncpa [#allocation4], 1 }
 0x3ef   :  { %1114 = vsyncpa [#allocation7], 1 }
 0x3f0   :  { %1115 = vsyncpa [#allocation5], 1 }

</bundles_post_ra>
